<compile_context>
chip_gen: v7x
topology: tpu7x:2x2x1
jax: 0.10.0
libtpu: 0.0.40
codegen_flags: <defaults>
</compile_context>

<pallas_src>
import jax
import jax.numpy as jnp
from jax import lax
from jax.experimental import pallas as pl
from jax.experimental.pallas import tpu as pltpu

BN_EPS = 1e-5
DROPOUT_P = 0.25


def _bn_dropout_relu_kernel(x_ref, g_ref, b_ref, o_ref):
    """x_ref: (N, TC, HW) f32; g_ref/b_ref: (N, TC, 1) = (gamma*mask, beta*mask)."""
    x = x_ref[...]                                         # (N, TC, HW)
    n, _, hw = x.shape
    inv_count = 1.0 / float(n * hw)

    # --- BatchNorm2d training-mode stats, per channel over (N, H, W) ---
    # One pass: sum and sum-of-squares. Reduce the batch axis first (cheap vreg
    # adds), then the lane axis (XLU reduce).
    xs = jnp.sum(x, axis=0, keepdims=True)                 # (1, TC, HW)
    xs2 = jnp.sum(x * x, axis=0, keepdims=True)            # (1, TC, HW)
    s1 = jnp.sum(xs, axis=2, keepdims=True)                # (1, TC, 1)
    s2 = jnp.sum(xs2, axis=2, keepdims=True)               # (1, TC, 1)
    mean = s1 * inv_count
    var = jnp.maximum(s2 * inv_count - mean * mean, 0.0)   # biased var, clamp >= 0
    inv_std = lax.rsqrt(var + BN_EPS)                      # (1, TC, 1)

    # --- fold BN affine + Dropout2d mask into one per-(n,c) FMA ---
    # scale = inv_std * gamma * mask ; shift = beta*mask - mean*scale
    scale = g_ref[...] * inv_std                           # (N, TC, 1)
    shift = b_ref[...] - mean * scale                      # (N, TC, 1)

    # --- affine + ReLU: 3 VALU ops per element ---
    o_ref[...] = jnp.maximum(x * scale + shift, 0.0).astype(o_ref.dtype)


def _pick_channel_block(C, N, HW, itemsize, budget_bytes=2 * 1024 * 1024):
    """Largest channel block TC that (a) divides C, (b) is a multiple of 8 or the
    full C (sublane/(8,128) rule), and (c) keeps the (N, TC, HW) block within a
    per-buffer budget that fits the default scoped-VMEM limit on v5e/v6e/v7x
    with double-buffered input + output streams."""
    per_channel = N * HW * itemsize
    candidates = [tc for tc in range(1, C + 1)
                  if C % tc == 0 and (tc == C or tc % 8 == 0)]
    fitting = [tc for tc in candidates if tc * per_channel <= budget_bytes]
    if fitting:
        best = max(fitting)
        # Prefer >= 2 grid steps when possible so both v7x TensorCores get work.
        if best == C:
            smaller = [tc for tc in fitting if tc < C]
            if smaller:
                best = max(smaller)
        return best
    # TODO(synk): if a single channel plane (N*H*W) exceeds the budget, split HW
    # as a trailing "arbitrary" grid axis with sum/sumsq scratch accumulators
    # instead of shrinking below one resident channel.
    return min(candidates)


def basic_unit_forward(x_nchw, gamma, beta, dropout_mask_nc):
    """x_nchw: (N, C, H, W) f32. gamma/beta: (C,). dropout_mask_nc: (N, C) with
    values 0 or 1/(1-p) (train-phase Dropout2d channel mask)."""
    N, C, H, W = x_nchw.shape
    HW = H * W

    # Free view (collapses contiguous trailing dims) — no HBM transpose.
    x3 = x_nchw.reshape(N, C, HW)

    # Fold BN affine params and the Dropout2d mask into per-(n, c) factors.
    g_nc = (gamma[None, :] * dropout_mask_nc).reshape(N, C, 1).astype(jnp.float32)
    b_nc = (beta[None, :] * dropout_mask_nc).reshape(N, C, 1).astype(jnp.float32)

    tc = _pick_channel_block(C, N, HW, x_nchw.dtype.itemsize)
    grid = (C // tc,)

    out = pl.pallas_call(
        _bn_dropout_relu_kernel,
        out_shape=jax.ShapeDtypeStruct((N, C, HW), x_nchw.dtype),
        grid=grid,
        in_specs=[
            pl.BlockSpec((N, tc, HW), lambda c: (0, c, 0)),   # x block (lane-dense)
            pl.BlockSpec((N, tc, 1), lambda c: (0, c, 0)),    # gamma*mask
            pl.BlockSpec((N, tc, 1), lambda c: (0, c, 0)),    # beta*mask
        ],
        out_specs=pl.BlockSpec((N, tc, HW), lambda c: (0, c, 0)),
        compiler_params=pltpu.CompilerParams(
            dimension_semantics=("parallel",),       # channel blocks are independent
            vmem_limit_bytes=32 * 1024 * 1024,       # safe on v5e/v6e/v7x; blocks sized to fit
        ),
    )(x3, g_nc, b_nc)

    return out.reshape(N, C, H, W)                   # free view back to NCHW


if __name__ == "__main__":
    key = jax.random.PRNGKey(0)
    k_x, k_drop = jax.random.split(key)

    N, C, H, W = 2, 4, 16, 16
    x = jax.random.normal(k_x, (N, C, H, W), dtype=jnp.float32)

    # BatchNorm2d parameters: PyTorch default init (weight=1, bias=0)
    gamma = jnp.ones((C,), dtype=jnp.float32)
    beta = jnp.zeros((C,), dtype=jnp.float32)

    # Dropout2d mask (train phase): keep each (n, c) channel with prob 1-p,
    # scale kept channels by 1/(1-p).
    keep = jax.random.bernoulli(k_drop, 1.0 - DROPOUT_P, (N, C))
    dropout_mask = keep.astype(jnp.float32) / (1.0 - DROPOUT_P)

    y = basic_unit_forward(x, gamma, beta, dropout_mask)
    jax.block_until_ready(y)

    # quick sanity check against a plain-JAX reference
    mean = jnp.mean(x, axis=(0, 2, 3), keepdims=True)
    var = jnp.mean((x - mean) ** 2, axis=(0, 2, 3), keepdims=True)
    ref = (x - mean) * lax.rsqrt(var + BN_EPS)
    ref = ref * gamma[None, :, None, None] + beta[None, :, None, None]
    ref = ref * dropout_mask[:, :, None, None]
    ref = jnp.maximum(ref, 0.0)
    assert jnp.allclose(y, ref, atol=1e-5, rtol=1e-5)

    print("KERNEL_OK")
</pallas_src>

<mosaic_0001>
module attributes {stable_mosaic.version = 11 : i64} {
  func.func @_bn_dropout_relu_kernel(%arg0: i32, %arg1: memref<2x4x256xf32, #tpu.memory_space<vmem>>, %arg2: memref<2x4x1xf32, #tpu.memory_space<vmem>>, %arg3: memref<2x4x1xf32, #tpu.memory_space<vmem>>, %arg4: memref<2x4x256xf32, #tpu.memory_space<vmem>>) attributes {dimension_semantics = [#tpu.dimension_semantics<parallel>], iteration_bounds = array<i64: 1>, scalar_prefetch = 0 : i64, scratch_operands = 0 : i64, tpu.core_type = #tpu.core_type<tc>, window_params = [{transform_indices = @transform_0, window_bounds = array<i64: 2, 4, 256>}, {transform_indices = @transform_1, window_bounds = array<i64: 2, 4, 1>}, {transform_indices = @transform_2, window_bounds = array<i64: 2, 4, 1>}, {transform_indices = @transform_3, window_bounds = array<i64: 2, 4, 256>}]} {
    %c0 = arith.constant 0 : index
    %c0_0 = arith.constant 0 : index
    %c0_1 = arith.constant 0 : index
    %0 = vector.load %arg1[%c0, %c0_0, %c0_1] : memref<2x4x256xf32, #tpu.memory_space<vmem>>, vector<2x4x256xf32>
    %cst = arith.constant dense<0.000000e+00> : vector<4x256xf32>
    %1 = vector.multi_reduction <add>, %0, %cst [0] : vector<2x4x256xf32> to vector<4x256xf32>
    %2 = vector.shape_cast %1 : vector<4x256xf32> to vector<1x4x256xf32>
    %3 = arith.mulf %0, %0 : vector<2x4x256xf32>
    %cst_2 = arith.constant dense<0.000000e+00> : vector<4x256xf32>
    %4 = vector.multi_reduction <add>, %3, %cst_2 [0] : vector<2x4x256xf32> to vector<4x256xf32>
    %5 = vector.shape_cast %4 : vector<4x256xf32> to vector<1x4x256xf32>
    %cst_3 = arith.constant dense<0.000000e+00> : vector<1x4xf32>
    %6 = vector.multi_reduction <add>, %2, %cst_3 [2] : vector<1x4x256xf32> to vector<1x4xf32>
    %7 = vector.shape_cast %6 : vector<1x4xf32> to vector<1x4x1xf32>
    %cst_4 = arith.constant dense<0.000000e+00> : vector<1x4xf32>
    %8 = vector.multi_reduction <add>, %5, %cst_4 [2] : vector<1x4x256xf32> to vector<1x4xf32>
    %9 = vector.shape_cast %8 : vector<1x4xf32> to vector<1x4x1xf32>
    %cst_5 = arith.constant 0.001953125 : f32
    %10 = vector.broadcast %cst_5 : f32 to vector<1x4x1xf32>
    %11 = arith.mulf %7, %10 : vector<1x4x1xf32>
    %cst_6 = arith.constant 0.001953125 : f32
    %12 = vector.broadcast %cst_6 : f32 to vector<1x4x1xf32>
    %13 = arith.mulf %9, %12 : vector<1x4x1xf32>
    %14 = arith.mulf %11, %11 : vector<1x4x1xf32>
    %15 = arith.subf %13, %14 : vector<1x4x1xf32>
    %cst_7 = arith.constant 0.000000e+00 : f32
    %16 = vector.broadcast %cst_7 : f32 to vector<1x4x1xf32>
    %17 = arith.maximumf %15, %16 : vector<1x4x1xf32>
    %cst_8 = arith.constant 9.99999974E-6 : f32
    %18 = vector.broadcast %cst_8 : f32 to vector<1x4x1xf32>
    %19 = arith.addf %17, %18 : vector<1x4x1xf32>
    %20 = math.rsqrt %19 : vector<1x4x1xf32>
    %c0_9 = arith.constant 0 : index
    %c0_10 = arith.constant 0 : index
    %c0_11 = arith.constant 0 : index
    %21 = vector.load %arg2[%c0_9, %c0_10, %c0_11] : memref<2x4x1xf32, #tpu.memory_space<vmem>>, vector<2x4x1xf32>
    %22 = vector.broadcast %20 : vector<1x4x1xf32> to vector<2x4x1xf32>
    %23 = arith.mulf %21, %22 : vector<2x4x1xf32>
    %c0_12 = arith.constant 0 : index
    %c0_13 = arith.constant 0 : index
    %c0_14 = arith.constant 0 : index
    %24 = vector.load %arg3[%c0_12, %c0_13, %c0_14] : memref<2x4x1xf32, #tpu.memory_space<vmem>>, vector<2x4x1xf32>
    %25 = vector.broadcast %11 : vector<1x4x1xf32> to vector<2x4x1xf32>
    %26 = arith.mulf %25, %23 : vector<2x4x1xf32>
    %27 = arith.subf %24, %26 : vector<2x4x1xf32>
    %28 = vector.broadcast %23 : vector<2x4x1xf32> to vector<2x4x256xf32>
    %29 = arith.mulf %0, %28 : vector<2x4x256xf32>
    %30 = vector.broadcast %27 : vector<2x4x1xf32> to vector<2x4x256xf32>
    %31 = arith.addf %29, %30 : vector<2x4x256xf32>
    %cst_15 = arith.constant 0.000000e+00 : f32
    %32 = vector.broadcast %cst_15 : f32 to vector<2x4x256xf32>
    %33 = arith.maximumf %31, %32 : vector<2x4x256xf32>
    %c0_16 = arith.constant 0 : index
    %c0_17 = arith.constant 0 : index
    %c0_18 = arith.constant 0 : index
    %34 = vector.load %arg4[%c0_16, %c0_17, %c0_18] : memref<2x4x256xf32, #tpu.memory_space<vmem>>, vector<2x4x256xf32>
    tpu.vector_store %arg4[%c0_16, %c0_17, %c0_18], %33 {strides = array<i32>} : memref<2x4x256xf32, #tpu.memory_space<vmem>>, vector<2x4x256xf32>,
    return
  }
  func.func @transform_0(%arg0: i32) -> (i32, i32, i32) {
    %c0_i32 = arith.constant 0 : i32
    %c0_i32_0 = arith.constant 0 : i32
    %c0_i32_1 = arith.constant 0 : i32
    return %c0_i32, %arg0, %c0_i32_0 : i32, i32, i32
  }
  func.func @transform_1(%arg0: i32) -> (i32, i32, i32) {
    %c0_i32 = arith.constant 0 : i32
    %c0_i32_0 = arith.constant 0 : i32
    %c0_i32_1 = arith.constant 0 : i32
    return %c0_i32, %arg0, %c0_i32_0 : i32, i32, i32
  }
  func.func @transform_2(%arg0: i32) -> (i32, i32, i32) {
    %c0_i32 = arith.constant 0 : i32
    %c0_i32_0 = arith.constant 0 : i32
    %c0_i32_1 = arith.constant 0 : i32
    return %c0_i32, %arg0, %c0_i32_0 : i32, i32, i32
  }
  func.func @transform_3(%arg0: i32) -> (i32, i32, i32) {
    %c0_i32 = arith.constant 0 : i32
    %c0_i32_0 = arith.constant 0 : i32
    %c0_i32_1 = arith.constant 0 : i32
    return %c0_i32, %arg0, %c0_i32_0 : i32, i32, i32
  }
}

</mosaic_0001>

<bundles_post_ra>
// kernel: tpu_custom_call.1
= control target key start
LH: loop header
LB: loop body
LE: loop exit
PB: predicated region body
PF: predicated region fallthrough
CT: control target
= control target key end

     0   :  { %vm23_vm0 = vcmask 1043456   ;;  %s261_s0 = inlined_call_operand.vmem [shape: f32[2,4,256], index: 0, kind: input, shape index: {}]   ;;  %s262_s1 = inlined_call_operand.vmem [shape: f32[2,4,1], index: 1, kind: input, shape index: {}]   ;;  %s263_s2 = inlined_call_operand.vmem [shape: f32[2,4,1], index: 2, kind: input, shape index: {}]   ;;  %s264_s3 = inlined_call_operand.hbm [shape: f32[2,4,256], index: 3, kind: output, shape index: {}]  }
   0x1   :  { %v206_v0 = vld [vmem:[%s261_s0] sm:$0xff]  ;;  %v211_v1 = vld [vmem:[%s261_s0 + $0x8] sm:$0xff] }
   0x2   :  { %8 = vsyncpa [#allocation3], 0  ;;  %v19_v2 = vcombine.high %v206_v0, %v206_v0  ;;  %v20_v3 = vcombine.high %v211_v1, %v211_v1  ;;  %v24_v4 = vsel %vm23_vm0, %v206_v0, 0.0  ;;  %v25_v5 = vsel %vm23_vm0, %v211_v1, 0.0  ;;  %v61_v35 = vld [vmem:[%s262_s1] sm:$0xf] }
   0x3   :  { %v26_v6 = vadd.f32 %v25_v5, %v24_v4  ;;  %v30_v7 = vmul.f32 %v206_v0, %v206_v0  ;;  %v31_v8 = vmul.f32 %v211_v1, %v211_v1  ;;  %v178_v26 = vmov 0   ;;  %v62_v36 = vld [vmem:[%s262_s1 + $0x4] sm:$0xf]  ;;  %v65_v40 = vld [vmem:[%s263_s2] sm:$0xf]  ;;  %s180_s1 = smov [#allocation2]  }
   0x4   :  { %v27_v9 = vsel %vm23_vm0, %v19_v2, 0.0  ;;  %v28_v10 = vsel %vm23_vm0, %v20_v3, 0.0  ;;  %148 = vset.pattern.permute.xlu1 %v178_v26  ;;  %149 = vset.pattern.permute.xlu0 %v178_v26  ;;  %v66_v44 = vld [vmem:[%s263_s2 + $0x4] sm:$0xf]  ;;  %v179_v46 = vmov 839922192   ;;  %v82_v48 = vlaneseq }
   0x5   :  { %v29_v11 = vadd.f32 %v28_v10, %v27_v9  ;;  %v44_v12 = vsel %vm23_vm0, %v26_v6, 0.0  ;;  %v34_v13 = vcombine.high %v30_v7, %v30_v7  ;;  %v35_v14 = vcombine.high %v31_v8, %v31_v8  ;;  %s132_s2 = sshll.u32 %s180_s1, 4  ;;  %s133_s2 = int_to_ptr.vmem [resolvable:$true] %s132_s2 }
   0x6   :  { %v38_v15 = vsel %vm23_vm0, %v30_v7, 0.0  ;;  %v39_v16 = vsel %vm23_vm0, %v31_v8, 0.0  ;;  %v80_v47 = vunpack.c.l.s4 %v179_v46  ;;  %v83_v50 = vshrl.u32 %v82_v48, 7  ;;  %s154_s23 = scalar_lea.vmem %s133_s2, 256  ;;  %p159_p1 = scmp.lt.s32.totalorder %s133_s2, %s133_s2 }
   0x7   :  { %v45_v17 = vsel %vm23_vm0, %v29_v11, 0.0  ;;  %v40_v18 = vadd.f32 %v39_v16, %v38_v15  ;;  %v41_v19 = vsel %vm23_vm0, %v34_v13, 0.0  ;;  %v42_v20 = vsel %vm23_vm0, %v35_v14, 0.0  ;;  %p155_p0 = scmp.ne.s32.totalorder %s133_s2, %s154_s23  ;;  %p160_p2 = scmp.lt.s32.totalorder %s154_s23, %s154_s23 }
   0x8   :  { %v46_v21 = vadd.f32 %v45_v17, %v44_v12  ;;  %v43_v22 = vadd.f32 %v42_v20, %v41_v19  ;;  %v81_v49 = vunpack.c.0.s8 %v80_v47 }
   0x9   :  { %v49_v23 = vsel %vm23_vm0, %v40_v18, 0.0  ;;  %p161_p3 = por %p160_p2, %p159_p1 }
   0xa   :  { %47 = vadd.xlane.f32.xlu0 %v46_v21  ;;  %v50_v24 = vsel %vm23_vm0, %v43_v22, 0.0  ;;  %v84_v51 = vsub.s32 %v81_v49, %v83_v50 }
   0xb   :  { %v51_v25 = vadd.f32 %v50_v24, %v49_v23  ;;  %p162_p4 = pnand %p161_p3, %p155_p0 }
   0xe   :  { %52 = vadd.xlane.f32.xlu0 %v51_v25 }
  0x97   :  { %v48_v27 = vpop.xlane.xlu0 %47 }
  0x98   :  { %v54_v28 = vmul.f32 0.001953125, %v48_v27 }
  0x9a   :  { %v56_v30 = vmul.f32 %v54_v28, %v54_v28 }
  0x9b   :  { %v53_v29 = vpop.xlane.xlu0 %52 }
  0x9c   :  { %v55_v31 = vmul.f32 0.001953125, %v53_v29 }
  0x9e   :  { %v57_v32 = vsub.f32 %v55_v31, %v56_v30 }
  0xa0   :  { %v58_v33 = vmax.f32 %v57_v32, 0.0 }
  0xa2   :  { %v59_v34 = vadd.f32 1e-05, %v58_v33 }
  0xa4   :  { %152 = vrsqrt.f32 %v59_v34 }
  0xae   :  { %v153_v37 = vpop.eup %152 }
  0xaf   :  { %v63_v38 = vmul.f32 %v153_v37, %v61_v35  ;;  %v64_v39 = vmul.f32 %v153_v37, %v62_v36 }
  0xb1   :  { %73 = vperm.xlu1 %148, %v63_v38   ;;  %v67_v41 = vmul.f32 %v63_v38, %v54_v28  ;;  %v68_v43 = vmul.f32 %v64_v39, %v54_v28 }
  0xb3   :  { %v69_v42 = vsub.f32 %v65_v40, %v67_v41  ;;  %v70_v45 = vsub.f32 %v66_v44, %v68_v43 }
  0xb5   :  { %77 = vperm.xlu1 %148, %v64_v39   ;;  %99 = vperm.xlu0 %149, %v69_v42  }
  0xb9   :  { %103 = vperm.xlu1 %148, %v70_v45  }
 0x130   :  { %v74_v52 = vpop.permute.xlu1 %73 }
 0x131   :  { %v85_v53 = vrot.slane %v74_v52, %v84_v51 }
 0x133   :  { %v95_v56 = vmul.f32 %v85_v53, %v206_v0 }
 0x134   :  { %v78_v54 = vpop.permute.xlu1 %77  ;;  %v100_v55 = vpop.permute.xlu0 %99 }
 0x135   :  { %v92_v57 = vrot.slane %v78_v54, %v84_v51  ;;  %v111_v58 = vrot.slane %v100_v55, %v84_v51 }
 0x137   :  { %v121_v59 = vadd.f32 %v111_v58, %v95_v56  ;;  %v96_v61 = vmul.f32 %v92_v57, %v211_v1 }
 0x138   :  { %v104_v60 = vpop.permute.xlu1 %103 }
 0x139   :  { %v123_v62 = vmax.f32 %v121_v59, 0.0  ;;  %v118_v63 = vrot.slane %v104_v60, %v84_v51 }
 0x13b   :  { %125 = vst [vmem:[#allocation2] sm:$0xff] %v123_v62  ;;  %v122_v2 = vadd.f32 %v118_v63, %v96_v61 }
 0x13d   :  { %v124_v3 = vmax.f32 %v122_v2, 0.0 }
 0x13f   :  { %126 = vst [vmem:[#allocation2 + $0x8] sm:$0xff] %v124_v3 }
 0x140   :  { %165 = shalt.err (!%p162_p4)
}
 0x141   :  { %s166_s26 = scalar_lea.hbm %s264_s3, 256 }
 0x142   :  { %p167_p5 = scmp.ne.s32.totalorder %s264_s3, %s166_s26  ;;  %p170_p6 = scmp.lt.u32.totalorder %s166_s26, %s264_s3 }
 0x144   :  { %p172_p7 = pnand %p170_p6, %p167_p5 }
 0x146   :  { %175 = shalt.err (!%p172_p7)
}
 0x147   :  { %s181_s4 = smov 128   ;;  %s182_s5 = smov 8  }
 0x148   :  { %138 = dma.vmem_to_hbm [thread:$0]  %s133_s2, 256, %s264_s3, [#allocation3], %s181_s4, %s181_s4, %s182_s5  }
 0x149   :  { %176 = dma.done.wait [#allocation3], 256  }
 0x14a   :  { %177 = vsyncadd [#allocation3], 4294967040 }
 0x14b   :  { %142 = vsyncpa [#allocation3], 1 }

</bundles_post_ra>
